<compile_context>
chip_gen: v7x
topology: tpu7x:2x2x1
jax: 0.10.0
libtpu: 0.0.40
codegen_flags: <defaults>
</compile_context>

<pallas_src>
import jax
import jax.numpy as jnp
from jax.experimental import pallas as pl
from jax.experimental.pallas import tpu as pltpu

NUM_DIMS = 2
LANE = 128
SUB = 8                 # sublanes per f32 tile
MAX_TILE_ROWS = 32      # 32 * 128 = 4096 lanes per grid step (review: 1024-4096)
EDGE_F = 11             # rot_rel_pos(2)|euler|dist|spherical|rot_vel(2)|rel_feat_i(4)

_PI = 3.141592653589793
_PI_2 = 1.5707963267948966
_PI_4 = 0.7853981633974483
_TAN_PI_8 = 0.4142135623730951


# ----------------------------- in-kernel math ------------------------------

def _recip(x):
    """EUP approximate reciprocal + one Newton step (~fp32 accurate).

    Keeps the divide off the VALU dependency chain (perf-review suggestion)
    while staying accurate enough for the atan polynomial input.
    """
    r = pl.reciprocal(x, approx=True)
    return r * (2.0 - x * r)


def _atan2(y, x):
    """Branchless float32 atan2 (Cephes-style atan polynomial).

    mul/add/select + EUP reciprocal only; accuracy ~1e-6 rad.
    atan2(0, 0) == 0 (matches torch).
    """
    ax = jnp.abs(x)
    ay = jnp.abs(y)
    mx = jnp.maximum(ax, ay)
    mn = jnp.minimum(ax, ay)
    t = mn * _recip(jnp.maximum(mx, jnp.float32(1e-30)))       # in [0, 1]
    red = t > _TAN_PI_8
    t2 = jnp.where(red, (t - 1.0) * _recip(t + 1.0), t)
    z = t2 * t2
    p = ((((8.05374449538e-2 * z - 1.38776856032e-1) * z
           + 1.99777106478e-1) * z - 3.33329491539e-1) * z) * t2 + t2
    r = jnp.where(red, p + jnp.float32(_PI_4), p)
    r = jnp.where(ay > ax, jnp.float32(_PI_2) - r, r)
    r = jnp.where(x < 0.0, jnp.float32(_PI) - r, r)
    r = jnp.where(y < 0.0, -r, r)
    return r


def _vel_to_cos_sin(vx, vy):
    """cos/sin of atan2(vy, vx) via rsqrt (EUP), i.e. the velocity rotation R."""
    n2 = vx * vx + vy * vy
    inv = jax.lax.rsqrt(jnp.maximum(n2, jnp.float32(1e-37)))
    nz = n2 > 0.0
    c = jnp.where(nz, vx * inv, jnp.float32(1.0))
    s = jnp.where(nz, vy * inv, jnp.float32(0.0))
    return c, s


# -------------------------------- kernels ----------------------------------

def node_kernel(x_ref, rel_ref, r_ref):
    # x_ref: [4, R, 128]; rows = (px, py, vx, vy).  Each row slab is vreg-dense.
    vx = x_ref[2]
    vy = x_ref[3]
    c, s = _vel_to_cos_sin(vx, vy)
    # Rinv = R^T = [[c, s], [-s, c]] ; canon_vel = Rinv @ v
    cvx = c * vx + s * vy
    cvy = c * vy - s * vx
    z = jnp.zeros_like(cvx)
    # rel_feat = cat([zeros_like(canon_vel), canon_vel]) -- direct row stores.
    rel_ref[0] = z
    rel_ref[1] = z
    rel_ref[2] = cvx
    rel_ref[3] = cvy
    # R = [[c, -s], [s, c]] flattened row-major, one slab per entry.
    r_ref[0] = c
    r_ref[1] = -s
    r_ref[2] = s
    r_ref[3] = c


def edge_kernel(xj_ref, xi_ref, e_ref):
    # xj_ref / xi_ref: [4, R, 128] sender / receiver (px, py, vx, vy).
    pjx, pjy, vjx, vjy = xj_ref[0], xj_ref[1], xj_ref[2], xj_ref[3]
    pix, piy, vix, viy = xi_ref[0], xi_ref[1], xi_ref[2], xi_ref[3]

    ci, si = _vel_to_cos_sin(vix, viy)   # receiver frame R_i
    cj, sj = _vel_to_cos_sin(vjx, vjy)   # sender frame R_j

    dx = pjx - pix
    dy = pjy - piy
    # R_i^{-1} = [[ci, si], [-si, ci]]
    rrx = ci * dx + si * dy              # rotated relative positions
    rry = ci * dy - si * dx

    # rotated_orientations = R_i^{-1} @ R_j ; euler = atan2(M10, M00)
    m00 = ci * cj + si * sj
    m10 = ci * sj - si * cj
    euler = _atan2(m10, m00)

    dist = jnp.sqrt(dx * dx + dy * dy)   # node distance (L2)
    sph = _atan2(rry, rrx)               # 2-D spherical (polar) angle, symmetric

    rvx = ci * vjx + si * vjy            # rotated sender velocities
    rvy = ci * vjy - si * vjx

    # rel_feat[recv] = [0, 0, canon_vel_i]
    civx = ci * vix + si * viy
    civy = ci * viy - si * vix
    z = jnp.zeros_like(civx)

    # Direct per-feature slab stores (no sublane concat / relayout).
    e_ref[0] = rrx
    e_ref[1] = rry
    e_ref[2] = euler
    e_ref[3] = dist
    e_ref[4] = sph
    e_ref[5] = rvx
    e_ref[6] = rvy
    e_ref[7] = z
    e_ref[8] = z
    e_ref[9] = civx
    e_ref[10] = civy


# -------------------------------- wrapper -----------------------------------

def _ceil_div(a, b):
    return -(-a // b)


def _tiling(count):
    """(rows_per_tile, grid, padded_lane_count) for the [*, rows, 128] layout.

    rows_per_tile is 8..32 (multiple of 8) -> 1024..4096 lanes per grid step:
    big enough to amortize per-step overhead, small enough that large graphs
    still produce many parallel steps (v7x megacore) and VMEM stays tiny.
    """
    rows = _ceil_div(max(count, 1), LANE)
    rows = min(MAX_TILE_ROWS, max(SUB, rows))
    rows = _ceil_div(rows, SUB) * SUB
    tile = rows * LANE
    grid = _ceil_div(max(count, 1), tile)
    return rows, int(grid), int(grid * tile)


def localizer_forward(x, send_edges, recv_edges, *, feature_major=False):
    """x: [N, 2*num_dims] f32; edges: int32 [E].

    Returns (rel_feat [N,4], R [N,2,2], edge_attr [E,11]); with
    feature_major=True returns ([4,N], [4,N] row-major R, [11,E]) and skips the
    final HBM transpose passes.
    """
    n = x.shape[0]
    e = send_edges.shape[0]

    # ---- per-node canonicalization ----
    nr_tile, n_grid, n_pad = _tiling(n)
    x_t = x.T.astype(jnp.float32)                       # [4, N]
    x_tp = jnp.pad(x_t, ((0, 0), (0, n_pad - n)))       # [4, n_pad]
    x_t3 = x_tp.reshape(4, n_pad // LANE, LANE)         # [4, R_n, 128]

    rel3, r3 = pl.pallas_call(
        node_kernel,
        out_shape=(jax.ShapeDtypeStruct((4, n_pad // LANE, LANE), jnp.float32),
                   jax.ShapeDtypeStruct((4, n_pad // LANE, LANE), jnp.float32)),
        grid=(n_grid,),
        in_specs=[pl.BlockSpec((4, nr_tile, LANE), lambda i: (0, i, 0))],
        out_specs=(pl.BlockSpec((4, nr_tile, LANE), lambda i: (0, i, 0)),
                   pl.BlockSpec((4, nr_tile, LANE), lambda i: (0, i, 0))),
        compiler_params=pltpu.CompilerParams(dimension_semantics=("parallel",)),
    )(x_t3)

    # ---- per-edge relative features (gather is glue) ----
    er_tile, e_grid, e_pad = _tiling(e)
    # Pad the (cheap int) index arrays, not the gathered feature data.
    send_p = jnp.pad(send_edges.astype(jnp.int32), (0, e_pad - e))
    recv_p = jnp.pad(recv_edges.astype(jnp.int32), (0, e_pad - e))
    # Gather straight from the transposed node table along the lane axis.
    xj3 = jnp.take(x_tp, send_p, axis=1).reshape(4, e_pad // LANE, LANE)
    xi3 = jnp.take(x_tp, recv_p, axis=1).reshape(4, e_pad // LANE, LANE)

    e3 = pl.pallas_call(
        edge_kernel,
        out_shape=jax.ShapeDtypeStruct((EDGE_F, e_pad // LANE, LANE), jnp.float32),
        grid=(e_grid,),
        in_specs=[pl.BlockSpec((4, er_tile, LANE), lambda i: (0, i, 0)),
                  pl.BlockSpec((4, er_tile, LANE), lambda i: (0, i, 0))],
        out_specs=pl.BlockSpec((EDGE_F, er_tile, LANE), lambda i: (0, i, 0)),
        compiler_params=pltpu.CompilerParams(dimension_semantics=("parallel",)),
    )(xj3, xi3)

    rel_t = rel3.reshape(4, n_pad)[:, :n]               # [4, N]
    r_t = r3.reshape(4, n_pad)[:, :n]                   # [4, N] (R row-major)
    e_t = e3.reshape(EDGE_F, e_pad)[:, :e]              # [11, E]

    if feature_major:
        return rel_t, r_t, e_t

    rel_feat = rel_t.T                                  # [N, 4]
    R = r_t.T.reshape(n, 2, 2)                          # [N, 2, 2]
    edge_attr = e_t.T                                   # [E, 11]
    return rel_feat, R, edge_attr


# ------------------------------- reference ----------------------------------

def _reference(x, send, recv):
    """Pure-JAX reference mirroring the PyTorch forward (2D)."""
    nd = NUM_DIMS

    def rotmat(vel):
        th = jnp.arctan2(vel[..., 1], vel[..., 0])
        c, s = jnp.cos(th), jnp.sin(th)
        return jnp.stack([jnp.stack([c, -s], -1), jnp.stack([s, c], -1)], -2)

    def rotate(v, R):
        return jnp.einsum('...ij,...j->...i', R, v)

    vel = x[..., nd:2 * nd]
    R = rotmat(vel)
    Rinv = jnp.swapaxes(R, -1, -2)
    canon_vel = rotate(vel, Rinv)
    rel_feat = jnp.concatenate([jnp.zeros_like(canon_vel), canon_vel], -1)

    xj, xi = x[send], x[recv]
    Ri = rotmat(xi[..., nd:2 * nd])
    Ri_inv = jnp.swapaxes(Ri, -1, -2)
    relpos = xj[..., :nd] - xi[..., :nd]
    rrp = rotate(relpos, Ri_inv)
    Rj = rotmat(xj[..., nd:2 * nd])
    RO = Ri_inv @ Rj
    euler = jnp.arctan2(RO[..., 1, 0], RO[..., 0, 0])[..., None]
    dist = jnp.linalg.norm(relpos, axis=-1, keepdims=True)
    sph = jnp.arctan2(rrp[..., 1], rrp[..., 0])[..., None]
    rvel = rotate(xj[..., nd:2 * nd], Ri_inv)
    edge_attr = jnp.concatenate([rrp, euler, dist, sph, rvel, rel_feat[recv]], -1)
    return rel_feat, R, edge_attr


if __name__ == "__main__":
    key = jax.random.PRNGKey(0)
    N = 8                                   # nodes
    x = jax.random.normal(key, (N, 2 * NUM_DIMS), dtype=jnp.float32)

    # fully-connected directed graph without self-loops: E = N*(N-1) = 56
    idx = jnp.arange(N, dtype=jnp.int32)
    send = jnp.repeat(idx, N)
    recv = jnp.tile(idx, N)
    mask = send != recv
    send, recv = send[mask], recv[mask]

    fwd = jax.jit(localizer_forward)
    rel_feat, R, edge_attr = fwd(x, send, recv)
    jax.block_until_ready((rel_feat, R, edge_attr))

    # sanity check against a pure-JAX reference of the torch forward
    rel_ref, R_ref, ea_ref = _reference(x, send, recv)
    assert rel_feat.shape == (N, 4) and R.shape == (N, 2, 2)
    assert edge_attr.shape == (send.shape[0], 11)
    assert bool(jnp.allclose(rel_feat, rel_ref, atol=1e-4, rtol=1e-4))
    assert bool(jnp.allclose(R, R_ref, atol=1e-4, rtol=1e-4))
    assert bool(jnp.allclose(edge_attr, ea_ref, atol=1e-4, rtol=1e-4))

    print("KERNEL_OK")
</pallas_src>

<mosaic_0001>
module attributes {stable_mosaic.version = 11 : i64} {
  func.func @node_kernel(%arg0: i32, %arg1: memref<4x8x128xf32, #tpu.memory_space<vmem>>, %arg2: memref<4x8x128xf32, #tpu.memory_space<vmem>>, %arg3: memref<4x8x128xf32, #tpu.memory_space<vmem>>) attributes {dimension_semantics = [#tpu.dimension_semantics<parallel>], iteration_bounds = array<i64: 1>, scalar_prefetch = 0 : i64, scratch_operands = 0 : i64, tpu.core_type = #tpu.core_type<tc>, window_params = [{transform_indices = @transform_0, window_bounds = array<i64: 4, 8, 128>}, {transform_indices = @transform_1, window_bounds = array<i64: 4, 8, 128>}, {transform_indices = @transform_2, window_bounds = array<i64: 4, 8, 128>}]} {
    %c2 = arith.constant 2 : index
    %c0 = arith.constant 0 : index
    %c0_0 = arith.constant 0 : index
    %0 = vector.load %arg1[%c2, %c0, %c0_0] : memref<4x8x128xf32, #tpu.memory_space<vmem>>, vector<1x8x128xf32>
    %1 = vector.shape_cast %0 : vector<1x8x128xf32> to vector<8x128xf32>
    %c3 = arith.constant 3 : index
    %c0_1 = arith.constant 0 : index
    %c0_2 = arith.constant 0 : index
    %2 = vector.load %arg1[%c3, %c0_1, %c0_2] : memref<4x8x128xf32, #tpu.memory_space<vmem>>, vector<1x8x128xf32>
    %3 = vector.shape_cast %2 : vector<1x8x128xf32> to vector<8x128xf32>
    %4 = arith.mulf %1, %1 : vector<8x128xf32>
    %5 = arith.mulf %3, %3 : vector<8x128xf32>
    %6 = arith.addf %4, %5 : vector<8x128xf32>
    %cst = arith.constant 9.99999991E-38 : f32
    %7 = vector.broadcast %cst : f32 to vector<8x128xf32>
    %8 = arith.maximumf %6, %7 : vector<8x128xf32>
    %9 = math.rsqrt %8 : vector<8x128xf32>
    %cst_3 = arith.constant 0.000000e+00 : f32
    %10 = vector.broadcast %cst_3 : f32 to vector<8x128xf32>
    %11 = arith.cmpf ogt, %6, %10 : vector<8x128xf32>
    %12 = arith.mulf %1, %9 : vector<8x128xf32>
    %cst_4 = arith.constant 1.000000e+00 : f32
    %13 = vector.broadcast %cst_4 : f32 to vector<8x128xf32>
    %14 = arith.select %11, %12, %13 : vector<8x128xi1>, vector<8x128xf32>
    %15 = arith.mulf %3, %9 : vector<8x128xf32>
    %cst_5 = arith.constant 0.000000e+00 : f32
    %16 = vector.broadcast %cst_5 : f32 to vector<8x128xf32>
    %17 = arith.select %11, %15, %16 : vector<8x128xi1>, vector<8x128xf32>
    %18 = arith.mulf %14, %1 : vector<8x128xf32>
    %19 = arith.mulf %17, %3 : vector<8x128xf32>
    %20 = arith.addf %18, %19 : vector<8x128xf32>
    %21 = arith.mulf %14, %3 : vector<8x128xf32>
    %22 = arith.mulf %17, %1 : vector<8x128xf32>
    %23 = arith.subf %21, %22 : vector<8x128xf32>
    %cst_6 = arith.constant 0.000000e+00 : f32
    %24 = vector.broadcast %cst_6 : f32 to vector<8x128xf32>
    %c0_7 = arith.constant 0 : index
    %c0_8 = arith.constant 0 : index
    %c0_9 = arith.constant 0 : index
    %25 = vector.load %arg2[%c0_7, %c0_8, %c0_9] : memref<4x8x128xf32, #tpu.memory_space<vmem>>, vector<1x8x128xf32>
    %26 = vector.shape_cast %25 : vector<1x8x128xf32> to vector<8x128xf32>
    %27 = vector.shape_cast %24 : vector<8x128xf32> to vector<1x8x128xf32>
    tpu.vector_store %arg2[%c0_7, %c0_8, %c0_9], %27 {strides = array<i32>} : memref<4x8x128xf32, #tpu.memory_space<vmem>>, vector<1x8x128xf32>,
    %c1 = arith.constant 1 : index
    %c0_10 = arith.constant 0 : index
    %c0_11 = arith.constant 0 : index
    %28 = vector.load %arg2[%c1, %c0_10, %c0_11] : memref<4x8x128xf32, #tpu.memory_space<vmem>>, vector<1x8x128xf32>
    %29 = vector.shape_cast %28 : vector<1x8x128xf32> to vector<8x128xf32>
    %30 = vector.shape_cast %24 : vector<8x128xf32> to vector<1x8x128xf32>
    tpu.vector_store %arg2[%c1, %c0_10, %c0_11], %30 {strides = array<i32>} : memref<4x8x128xf32, #tpu.memory_space<vmem>>, vector<1x8x128xf32>,
    %c2_12 = arith.constant 2 : index
    %c0_13 = arith.constant 0 : index
    %c0_14 = arith.constant 0 : index
    %31 = vector.load %arg2[%c2_12, %c0_13, %c0_14] : memref<4x8x128xf32, #tpu.memory_space<vmem>>, vector<1x8x128xf32>
    %32 = vector.shape_cast %31 : vector<1x8x128xf32> to vector<8x128xf32>
    %33 = vector.shape_cast %20 : vector<8x128xf32> to vector<1x8x128xf32>
    tpu.vector_store %arg2[%c2_12, %c0_13, %c0_14], %33 {strides = array<i32>} : memref<4x8x128xf32, #tpu.memory_space<vmem>>, vector<1x8x128xf32>,
    %c3_15 = arith.constant 3 : index
    %c0_16 = arith.constant 0 : index
    %c0_17 = arith.constant 0 : index
    %34 = vector.load %arg2[%c3_15, %c0_16, %c0_17] : memref<4x8x128xf32, #tpu.memory_space<vmem>>, vector<1x8x128xf32>
    %35 = vector.shape_cast %34 : vector<1x8x128xf32> to vector<8x128xf32>
    %36 = vector.shape_cast %23 : vector<8x128xf32> to vector<1x8x128xf32>
    tpu.vector_store %arg2[%c3_15, %c0_16, %c0_17], %36 {strides = array<i32>} : memref<4x8x128xf32, #tpu.memory_space<vmem>>, vector<1x8x128xf32>,
    %c0_18 = arith.constant 0 : index
    %c0_19 = arith.constant 0 : index
    %c0_20 = arith.constant 0 : index
    %37 = vector.load %arg3[%c0_18, %c0_19, %c0_20] : memref<4x8x128xf32, #tpu.memory_space<vmem>>, vector<1x8x128xf32>
    %38 = vector.shape_cast %37 : vector<1x8x128xf32> to vector<8x128xf32>
    %39 = vector.shape_cast %14 : vector<8x128xf32> to vector<1x8x128xf32>
    tpu.vector_store %arg3[%c0_18, %c0_19, %c0_20], %39 {strides = array<i32>} : memref<4x8x128xf32, #tpu.memory_space<vmem>>, vector<1x8x128xf32>,
    %cst_21 = arith.constant 0.000000e+00 : f32
    %40 = vector.broadcast %cst_21 : f32 to vector<8x128xf32>
    %41 = arith.subf %40, %17 : vector<8x128xf32>
    %c1_22 = arith.constant 1 : index
    %c0_23 = arith.constant 0 : index
    %c0_24 = arith.constant 0 : index
    %42 = vector.load %arg3[%c1_22, %c0_23, %c0_24] : memref<4x8x128xf32, #tpu.memory_space<vmem>>, vector<1x8x128xf32>
    %43 = vector.shape_cast %42 : vector<1x8x128xf32> to vector<8x128xf32>
    %44 = vector.shape_cast %41 : vector<8x128xf32> to vector<1x8x128xf32>
    tpu.vector_store %arg3[%c1_22, %c0_23, %c0_24], %44 {strides = array<i32>} : memref<4x8x128xf32, #tpu.memory_space<vmem>>, vector<1x8x128xf32>,
    %c2_25 = arith.constant 2 : index
    %c0_26 = arith.constant 0 : index
    %c0_27 = arith.constant 0 : index
    %45 = vector.load %arg3[%c2_25, %c0_26, %c0_27] : memref<4x8x128xf32, #tpu.memory_space<vmem>>, vector<1x8x128xf32>
    %46 = vector.shape_cast %45 : vector<1x8x128xf32> to vector<8x128xf32>
    %47 = vector.shape_cast %17 : vector<8x128xf32> to vector<1x8x128xf32>
    tpu.vector_store %arg3[%c2_25, %c0_26, %c0_27], %47 {strides = array<i32>} : memref<4x8x128xf32, #tpu.memory_space<vmem>>, vector<1x8x128xf32>,
    %c3_28 = arith.constant 3 : index
    %c0_29 = arith.constant 0 : index
    %c0_30 = arith.constant 0 : index
    %48 = vector.load %arg3[%c3_28, %c0_29, %c0_30] : memref<4x8x128xf32, #tpu.memory_space<vmem>>, vector<1x8x128xf32>
    %49 = vector.shape_cast %48 : vector<1x8x128xf32> to vector<8x128xf32>
    %50 = vector.shape_cast %14 : vector<8x128xf32> to vector<1x8x128xf32>
    tpu.vector_store %arg3[%c3_28, %c0_29, %c0_30], %50 {strides = array<i32>} : memref<4x8x128xf32, #tpu.memory_space<vmem>>, vector<1x8x128xf32>,
    return
  }
  func.func @transform_0(%arg0: i32) -> (i32, i32, i32) {
    %c0_i32 = arith.constant 0 : i32
    %c0_i32_0 = arith.constant 0 : i32
    %c0_i32_1 = arith.constant 0 : i32
    return %c0_i32, %arg0, %c0_i32_0 : i32, i32, i32
  }
  func.func @transform_1(%arg0: i32) -> (i32, i32, i32) {
    %c0_i32 = arith.constant 0 : i32
    %c0_i32_0 = arith.constant 0 : i32
    %c0_i32_1 = arith.constant 0 : i32
    return %c0_i32, %arg0, %c0_i32_0 : i32, i32, i32
  }
  func.func @transform_2(%arg0: i32) -> (i32, i32, i32) {
    %c0_i32 = arith.constant 0 : i32
    %c0_i32_0 = arith.constant 0 : i32
    %c0_i32_1 = arith.constant 0 : i32
    return %c0_i32, %arg0, %c0_i32_0 : i32, i32, i32
  }
}

module attributes {stable_mosaic.version = 11 : i64} {
  func.func @edge_kernel(%arg0: i32, %arg1: memref<4x8x128xf32, #tpu.memory_space<vmem>>, %arg2: memref<4x8x128xf32, #tpu.memory_space<vmem>>, %arg3: memref<11x8x128xf32, #tpu.memory_space<vmem>>) attributes {dimension_semantics = [#tpu.dimension_semantics<parallel>], iteration_bounds = array<i64: 1>, scalar_prefetch = 0 : i64, scratch_operands = 0 : i64, tpu.core_type = #tpu.core_type<tc>, window_params = [{transform_indices = @transform_0, window_bounds = array<i64: 4, 8, 128>}, {transform_indices = @transform_1, window_bounds = array<i64: 4, 8, 128>}, {transform_indices = @transform_2, window_bounds = array<i64: 11, 8, 128>}]} {
    %c0 = arith.constant 0 : index
    %c0_0 = arith.constant 0 : index
    %c0_1 = arith.constant 0 : index
    %0 = vector.load %arg1[%c0, %c0_0, %c0_1] : memref<4x8x128xf32, #tpu.memory_space<vmem>>, vector<1x8x128xf32>
    %1 = vector.shape_cast %0 : vector<1x8x128xf32> to vector<8x128xf32>
    %c1 = arith.constant 1 : index
    %c0_2 = arith.constant 0 : index
    %c0_3 = arith.constant 0 : index
    %2 = vector.load %arg1[%c1, %c0_2, %c0_3] : memref<4x8x128xf32, #tpu.memory_space<vmem>>, vector<1x8x128xf32>
    %3 = vector.shape_cast %2 : vector<1x8x128xf32> to vector<8x128xf32>
    %c2 = arith.constant 2 : index
    %c0_4 = arith.constant 0 : index
    %c0_5 = arith.constant 0 : index
    %4 = vector.load %arg1[%c2, %c0_4, %c0_5] : memref<4x8x128xf32, #tpu.memory_space<vmem>>, vector<1x8x128xf32>
    %5 = vector.shape_cast %4 : vector<1x8x128xf32> to vector<8x128xf32>
    %c3 = arith.constant 3 : index
    %c0_6 = arith.constant 0 : index
    %c0_7 = arith.constant 0 : index
    %6 = vector.load %arg1[%c3, %c0_6, %c0_7] : memref<4x8x128xf32, #tpu.memory_space<vmem>>, vector<1x8x128xf32>
    %7 = vector.shape_cast %6 : vector<1x8x128xf32> to vector<8x128xf32>
    %c0_8 = arith.constant 0 : index
    %c0_9 = arith.constant 0 : index
    %c0_10 = arith.constant 0 : index
    %8 = vector.load %arg2[%c0_8, %c0_9, %c0_10] : memref<4x8x128xf32, #tpu.memory_space<vmem>>, vector<1x8x128xf32>
    %9 = vector.shape_cast %8 : vector<1x8x128xf32> to vector<8x128xf32>
    %c1_11 = arith.constant 1 : index
    %c0_12 = arith.constant 0 : index
    %c0_13 = arith.constant 0 : index
    %10 = vector.load %arg2[%c1_11, %c0_12, %c0_13] : memref<4x8x128xf32, #tpu.memory_space<vmem>>, vector<1x8x128xf32>
    %11 = vector.shape_cast %10 : vector<1x8x128xf32> to vector<8x128xf32>
    %c2_14 = arith.constant 2 : index
    %c0_15 = arith.constant 0 : index
    %c0_16 = arith.constant 0 : index
    %12 = vector.load %arg2[%c2_14, %c0_15, %c0_16] : memref<4x8x128xf32, #tpu.memory_space<vmem>>, vector<1x8x128xf32>
    %13 = vector.shape_cast %12 : vector<1x8x128xf32> to vector<8x128xf32>
    %c3_17 = arith.constant 3 : index
    %c0_18 = arith.constant 0 : index
    %c0_19 = arith.constant 0 : index
    %14 = vector.load %arg2[%c3_17, %c0_18, %c0_19] : memref<4x8x128xf32, #tpu.memory_space<vmem>>, vector<1x8x128xf32>
    %15 = vector.shape_cast %14 : vector<1x8x128xf32> to vector<8x128xf32>
    %16 = arith.mulf %13, %13 : vector<8x128xf32>
    %17 = arith.mulf %15, %15 : vector<8x128xf32>
    %18 = arith.addf %16, %17 : vector<8x128xf32>
    %cst = arith.constant 9.99999991E-38 : f32
    %19 = vector.broadcast %cst : f32 to vector<8x128xf32>
    %20 = arith.maximumf %18, %19 : vector<8x128xf32>
    %21 = math.rsqrt %20 : vector<8x128xf32>
    %cst_20 = arith.constant 0.000000e+00 : f32
    %22 = vector.broadcast %cst_20 : f32 to vector<8x128xf32>
    %23 = arith.cmpf ogt, %18, %22 : vector<8x128xf32>
    %24 = arith.mulf %13, %21 : vector<8x128xf32>
    %cst_21 = arith.constant 1.000000e+00 : f32
    %25 = vector.broadcast %cst_21 : f32 to vector<8x128xf32>
    %26 = arith.select %23, %24, %25 : vector<8x128xi1>, vector<8x128xf32>
    %27 = arith.mulf %15, %21 : vector<8x128xf32>
    %cst_22 = arith.constant 0.000000e+00 : f32
    %28 = vector.broadcast %cst_22 : f32 to vector<8x128xf32>
    %29 = arith.select %23, %27, %28 : vector<8x128xi1>, vector<8x128xf32>
    %30 = arith.mulf %5, %5 : vector<8x128xf32>
    %31 = arith.mulf %7, %7 : vector<8x128xf32>
    %32 = arith.addf %30, %31 : vector<8x128xf32>
    %cst_23 = arith.constant 9.99999991E-38 : f32
    %33 = vector.broadcast %cst_23 : f32 to vector<8x128xf32>
    %34 = arith.maximumf %32, %33 : vector<8x128xf32>
    %35 = math.rsqrt %34 : vector<8x128xf32>
    %cst_24 = arith.constant 0.000000e+00 : f32
    %36 = vector.broadcast %cst_24 : f32 to vector<8x128xf32>
    %37 = arith.cmpf ogt, %32, %36 : vector<8x128xf32>
    %38 = arith.mulf %5, %35 : vector<8x128xf32>
    %cst_25 = arith.constant 1.000000e+00 : f32
    %39 = vector.broadcast %cst_25 : f32 to vector<8x128xf32>
    %40 = arith.select %37, %38, %39 : vector<8x128xi1>, vector<8x128xf32>
    %41 = arith.mulf %7, %35 : vector<8x128xf32>
    %cst_26 = arith.constant 0.000000e+00 : f32
    %42 = vector.broadcast %cst_26 : f32 to vector<8x128xf32>
    %43 = arith.select %37, %41, %42 : vector<8x128xi1>, vector<8x128xf32>
    %44 = arith.subf %1, %9 : vector<8x128xf32>
    %45 = arith.subf %3, %11 : vector<8x128xf32>
    %46 = arith.mulf %26, %44 : vector<8x128xf32>
    %47 = arith.mulf %29, %45 : vector<8x128xf32>
    %48 = arith.addf %46, %47 : vector<8x128xf32>
    %49 = arith.mulf %26, %45 : vector<8x128xf32>
    %50 = arith.mulf %29, %44 : vector<8x128xf32>
    %51 = arith.subf %49, %50 : vector<8x128xf32>
    %52 = arith.mulf %26, %40 : vector<8x128xf32>
    %53 = arith.mulf %29, %43 : vector<8x128xf32>
    %54 = arith.addf %52, %53 : vector<8x128xf32>
    %55 = arith.mulf %26, %43 : vector<8x128xf32>
    %56 = arith.mulf %29, %40 : vector<8x128xf32>
    %57 = arith.subf %55, %56 : vector<8x128xf32>
    %58 = math.absf %54 : vector<8x128xf32>
    %59 = math.absf %57 : vector<8x128xf32>
    %60 = arith.maximumf %58, %59 : vector<8x128xf32>
    %61 = arith.minimumf %58, %59 : vector<8x128xf32>
    %cst_27 = arith.constant 1.000000e-30 : f32
    %62 = vector.broadcast %cst_27 : f32 to vector<8x128xf32>
    %63 = arith.maximumf %60, %62 : vector<8x128xf32>
    %64 = tpu.reciprocal %63 {approx = true} : vector<8x128xf32> -> vector<8x128xf32>
    %65 = arith.mulf %63, %64 : vector<8x128xf32>
    %cst_28 = arith.constant 2.000000e+00 : f32
    %66 = vector.broadcast %cst_28 : f32 to vector<8x128xf32>
    %67 = arith.subf %66, %65 : vector<8x128xf32>
    %68 = arith.mulf %64, %67 : vector<8x128xf32>
    %69 = arith.mulf %61, %68 : vector<8x128xf32>
    %cst_29 = arith.constant 0.414213568 : f32
    %70 = vector.broadcast %cst_29 : f32 to vector<8x128xf32>
    %71 = arith.cmpf ogt, %69, %70 : vector<8x128xf32>
    %cst_30 = arith.constant 1.000000e+00 : f32
    %72 = vector.broadcast %cst_30 : f32 to vector<8x128xf32>
    %73 = arith.subf %69, %72 : vector<8x128xf32>
    %cst_31 = arith.constant 1.000000e+00 : f32
    %74 = vector.broadcast %cst_31 : f32 to vector<8x128xf32>
    %75 = arith.addf %69, %74 : vector<8x128xf32>
    %76 = tpu.reciprocal %75 {approx = true} : vector<8x128xf32> -> vector<8x128xf32>
    %77 = arith.mulf %75, %76 : vector<8x128xf32>
    %cst_32 = arith.constant 2.000000e+00 : f32
    %78 = vector.broadcast %cst_32 : f32 to vector<8x128xf32>
    %79 = arith.subf %78, %77 : vector<8x128xf32>
    %80 = arith.mulf %76, %79 : vector<8x128xf32>
    %81 = arith.mulf %73, %80 : vector<8x128xf32>
    %82 = arith.select %71, %81, %69 : vector<8x128xi1>, vector<8x128xf32>
    %83 = arith.mulf %82, %82 : vector<8x128xf32>
    %cst_33 = arith.constant 0.0805374458 : f32
    %84 = vector.broadcast %cst_33 : f32 to vector<8x128xf32>
    %85 = arith.mulf %84, %83 : vector<8x128xf32>
    %cst_34 = arith.constant 0.138776854 : f32
    %86 = vector.broadcast %cst_34 : f32 to vector<8x128xf32>
    %87 = arith.subf %85, %86 : vector<8x128xf32>
    %88 = arith.mulf %87, %83 : vector<8x128xf32>
    %cst_35 = arith.constant 0.199777111 : f32
    %89 = vector.broadcast %cst_35 : f32 to vector<8x128xf32>
    %90 = arith.addf %88, %89 : vector<8x128xf32>
    %91 = arith.mulf %90, %83 : vector<8x128xf32>
    %cst_36 = arith.constant 0.333329499 : f32
    %92 = vector.broadcast %cst_36 : f32 to vector<8x128xf32>
    %93 = arith.subf %91, %92 : vector<8x128xf32>
    %94 = arith.mulf %93, %83 : vector<8x128xf32>
    %95 = arith.mulf %94, %82 : vector<8x128xf32>
    %96 = arith.addf %95, %82 : vector<8x128xf32>
    %cst_37 = arith.constant 0.785398185 : f32
    %97 = vector.broadcast %cst_37 : f32 to vector<8x128xf32>
    %98 = arith.addf %96, %97 : vector<8x128xf32>
    %99 = arith.select %71, %98, %96 : vector<8x128xi1>, vector<8x128xf32>
    %100 = arith.cmpf ogt, %59, %58 : vector<8x128xf32>
    %cst_38 = arith.constant 1.57079637 : f32
    %101 = vector.broadcast %cst_38 : f32 to vector<8x128xf32>
    %102 = arith.subf %101, %99 : vector<8x128xf32>
    %103 = arith.select %100, %102, %99 : vector<8x128xi1>, vector<8x128xf32>
    %cst_39 = arith.constant 0.000000e+00 : f32
    %104 = vector.broadcast %cst_39 : f32 to vector<8x128xf32>
    %105 = arith.cmpf olt, %54, %104 : vector<8x128xf32>
    %cst_40 = arith.constant 3.14159274 : f32
    %106 = vector.broadcast %cst_40 : f32 to vector<8x128xf32>
    %107 = arith.subf %106, %103 : vector<8x128xf32>
    %108 = arith.select %105, %107, %103 : vector<8x128xi1>, vector<8x128xf32>
    %cst_41 = arith.constant 0.000000e+00 : f32
    %109 = vector.broadcast %cst_41 : f32 to vector<8x128xf32>
    %110 = arith.cmpf olt, %57, %109 : vector<8x128xf32>
    %cst_42 = arith.constant 0.000000e+00 : f32
    %111 = vector.broadcast %cst_42 : f32 to vector<8x128xf32>
    %112 = arith.subf %111, %108 : vector<8x128xf32>
    %113 = arith.select %110, %112, %108 : vector<8x128xi1>, vector<8x128xf32>
    %114 = arith.mulf %44, %44 : vector<8x128xf32>
    %115 = arith.mulf %45, %45 : vector<8x128xf32>
    %116 = arith.addf %114, %115 : vector<8x128xf32>
    %117 = math.sqrt %116 : vector<8x128xf32>
    %118 = math.absf %48 : vector<8x128xf32>
    %119 = math.absf %51 : vector<8x128xf32>
    %120 = arith.maximumf %118, %119 : vector<8x128xf32>
    %121 = arith.minimumf %118, %119 : vector<8x128xf32>
    %cst_43 = arith.constant 1.000000e-30 : f32
    %122 = vector.broadcast %cst_43 : f32 to vector<8x128xf32>
    %123 = arith.maximumf %120, %122 : vector<8x128xf32>
    %124 = tpu.reciprocal %123 {approx = true} : vector<8x128xf32> -> vector<8x128xf32>
    %125 = arith.mulf %123, %124 : vector<8x128xf32>
    %cst_44 = arith.constant 2.000000e+00 : f32
    %126 = vector.broadcast %cst_44 : f32 to vector<8x128xf32>
    %127 = arith.subf %126, %125 : vector<8x128xf32>
    %128 = arith.mulf %124, %127 : vector<8x128xf32>
    %129 = arith.mulf %121, %128 : vector<8x128xf32>
    %cst_45 = arith.constant 0.414213568 : f32
    %130 = vector.broadcast %cst_45 : f32 to vector<8x128xf32>
    %131 = arith.cmpf ogt, %129, %130 : vector<8x128xf32>
    %cst_46 = arith.constant 1.000000e+00 : f32
    %132 = vector.broadcast %cst_46 : f32 to vector<8x128xf32>
    %133 = arith.subf %129, %132 : vector<8x128xf32>
    %cst_47 = arith.constant 1.000000e+00 : f32
    %134 = vector.broadcast %cst_47 : f32 to vector<8x128xf32>
    %135 = arith.addf %129, %134 : vector<8x128xf32>
    %136 = tpu.reciprocal %135 {approx = true} : vector<8x128xf32> -> vector<8x128xf32>
    %137 = arith.mulf %135, %136 : vector<8x128xf32>
    %cst_48 = arith.constant 2.000000e+00 : f32
    %138 = vector.broadcast %cst_48 : f32 to vector<8x128xf32>
    %139 = arith.subf %138, %137 : vector<8x128xf32>
    %140 = arith.mulf %136, %139 : vector<8x128xf32>
    %141 = arith.mulf %133, %140 : vector<8x128xf32>
    %142 = arith.select %131, %141, %129 : vector<8x128xi1>, vector<8x128xf32>
    %143 = arith.mulf %142, %142 : vector<8x128xf32>
    %cst_49 = arith.constant 0.0805374458 : f32
    %144 = vector.broadcast %cst_49 : f32 to vector<8x128xf32>
    %145 = arith.mulf %144, %143 : vector<8x128xf32>
    %cst_50 = arith.constant 0.138776854 : f32
    %146 = vector.broadcast %cst_50 : f32 to vector<8x128xf32>
    %147 = arith.subf %145, %146 : vector<8x128xf32>
    %148 = arith.mulf %147, %143 : vector<8x128xf32>
    %cst_51 = arith.constant 0.199777111 : f32
    %149 = vector.broadcast %cst_51 : f32 to vector<8x128xf32>
    %150 = arith.addf %148, %149 : vector<8x128xf32>
    %151 = arith.mulf %150, %143 : vector<8x128xf32>
    %cst_52 = arith.constant 0.333329499 : f32
    %152 = vector.broadcast %cst_52 : f32 to vector<8x128xf32>
    %153 = arith.subf %151, %152 : vector<8x128xf32>
    %154 = arith.mulf %153, %143 : vector<8x128xf32>
    %155 = arith.mulf %154, %142 : vector<8x128xf32>
    %156 = arith.addf %155, %142 : vector<8x128xf32>
    %cst_53 = arith.constant 0.785398185 : f32
    %157 = vector.broadcast %cst_53 : f32 to vector<8x128xf32>
    %158 = arith.addf %156, %157 : vector<8x128xf32>
    %159 = arith.select %131, %158, %156 : vector<8x128xi1>, vector<8x128xf32>
    %160 = arith.cmpf ogt, %119, %118 : vector<8x128xf32>
    %cst_54 = arith.constant 1.57079637 : f32
    %161 = vector.broadcast %cst_54 : f32 to vector<8x128xf32>
    %162 = arith.subf %161, %159 : vector<8x128xf32>
    %163 = arith.select %160, %162, %159 : vector<8x128xi1>, vector<8x128xf32>
    %cst_55 = arith.constant 0.000000e+00 : f32
    %164 = vector.broadcast %cst_55 : f32 to vector<8x128xf32>
    %165 = arith.cmpf olt, %48, %164 : vector<8x128xf32>
    %cst_56 = arith.constant 3.14159274 : f32
    %166 = vector.broadcast %cst_56 : f32 to vector<8x128xf32>
    %167 = arith.subf %166, %163 : vector<8x128xf32>
    %168 = arith.select %165, %167, %163 : vector<8x128xi1>, vector<8x128xf32>
    %cst_57 = arith.constant 0.000000e+00 : f32
    %169 = vector.broadcast %cst_57 : f32 to vector<8x128xf32>
    %170 = arith.cmpf olt, %51, %169 : vector<8x128xf32>
    %cst_58 = arith.constant 0.000000e+00 : f32
    %171 = vector.broadcast %cst_58 : f32 to vector<8x128xf32>
    %172 = arith.subf %171, %168 : vector<8x128xf32>
    %173 = arith.select %170, %172, %168 : vector<8x128xi1>, vector<8x128xf32>
    %174 = arith.mulf %26, %5 : vector<8x128xf32>
    %175 = arith.mulf %29, %7 : vector<8x128xf32>
    %176 = arith.addf %174, %175 : vector<8x128xf32>
    %177 = arith.mulf %26, %7 : vector<8x128xf32>
    %178 = arith.mulf %29, %5 : vector<8x128xf32>
    %179 = arith.subf %177, %178 : vector<8x128xf32>
    %180 = arith.mulf %26, %13 : vector<8x128xf32>
    %181 = arith.mulf %29, %15 : vector<8x128xf32>
    %182 = arith.addf %180, %181 : vector<8x128xf32>
    %183 = arith.mulf %26, %15 : vector<8x128xf32>
    %184 = arith.mulf %29, %13 : vector<8x128xf32>
    %185 = arith.subf %183, %184 : vector<8x128xf32>
    %cst_59 = arith.constant 0.000000e+00 : f32
    %186 = vector.broadcast %cst_59 : f32 to vector<8x128xf32>
    %c0_60 = arith.constant 0 : index
    %c0_61 = arith.constant 0 : index
    %c0_62 = arith.constant 0 : index
    %187 = vector.load %arg3[%c0_60, %c0_61, %c0_62] : memref<11x8x128xf32, #tpu.memory_space<vmem>>, vector<1x8x128xf32>
    %188 = vector.shape_cast %187 : vector<1x8x128xf32> to vector<8x128xf32>
    %189 = vector.shape_cast %48 : vector<8x128xf32> to vector<1x8x128xf32>
    tpu.vector_store %arg3[%c0_60, %c0_61, %c0_62], %189 {strides = array<i32>} : memref<11x8x128xf32, #tpu.memory_space<vmem>>, vector<1x8x128xf32>,
    %c1_63 = arith.constant 1 : index
    %c0_64 = arith.constant 0 : index
    %c0_65 = arith.constant 0 : index
    %190 = vector.load %arg3[%c1_63, %c0_64, %c0_65] : memref<11x8x128xf32, #tpu.memory_space<vmem>>, vector<1x8x128xf32>
    %191 = vector.shape_cast %190 : vector<1x8x128xf32> to vector<8x128xf32>
    %192 = vector.shape_cast %51 : vector<8x128xf32> to vector<1x8x128xf32>
    tpu.vector_store %arg3[%c1_63, %c0_64, %c0_65], %192 {strides = array<i32>} : memref<11x8x128xf32, #tpu.memory_space<vmem>>, vector<1x8x128xf32>,
    %c2_66 = arith.constant 2 : index
    %c0_67 = arith.constant 0 : index
    %c0_68 = arith.constant 0 : index
    %193 = vector.load %arg3[%c2_66, %c0_67, %c0_68] : memref<11x8x128xf32, #tpu.memory_space<vmem>>, vector<1x8x128xf32>
    %194 = vector.shape_cast %193 : vector<1x8x128xf32> to vector<8x128xf32>
    %195 = vector.shape_cast %113 : vector<8x128xf32> to vector<1x8x128xf32>
    tpu.vector_store %arg3[%c2_66, %c0_67, %c0_68], %195 {strides = array<i32>} : memref<11x8x128xf32, #tpu.memory_space<vmem>>, vector<1x8x128xf32>,
    %c3_69 = arith.constant 3 : index
    %c0_70 = arith.constant 0 : index
    %c0_71 = arith.constant 0 : index
    %196 = vector.load %arg3[%c3_69, %c0_70, %c0_71] : memref<11x8x128xf32, #tpu.memory_space<vmem>>, vector<1x8x128xf32>
    %197 = vector.shape_cast %196 : vector<1x8x128xf32> to vector<8x128xf32>
    %198 = vector.shape_cast %117 : vector<8x128xf32> to vector<1x8x128xf32>
    tpu.vector_store %arg3[%c3_69, %c0_70, %c0_71], %198 {strides = array<i32>} : memref<11x8x128xf32, #tpu.memory_space<vmem>>, vector<1x8x128xf32>,
    %c4 = arith.constant 4 : index
    %c0_72 = arith.constant 0 : index
    %c0_73 = arith.constant 0 : index
    %199 = vector.load %arg3[%c4, %c0_72, %c0_73] : memref<11x8x128xf32, #tpu.memory_space<vmem>>, vector<1x8x128xf32>
    %200 = vector.shape_cast %199 : vector<1x8x128xf32> to vector<8x128xf32>
    %201 = vector.shape_cast %173 : vector<8x128xf32> to vector<1x8x128xf32>
    tpu.vector_store %arg3[%c4, %c0_72, %c0_73], %201 {strides = array<i32>} : memref<11x8x128xf32, #tpu.memory_space<vmem>>, vector<1x8x128xf32>,
    %c5 = arith.constant 5 : index
    %c0_74 = arith.constant 0 : index
    %c0_75 = arith.constant 0 : index
    %202 = vector.load %arg3[%c5, %c0_74, %c0_75] : memref<11x8x128xf32, #tpu.memory_space<vmem>>, vector<1x8x128xf32>
    %203 = vector.shape_cast %202 : vector<1x8x128xf32> to vector<8x128xf32>
    %204 = vector.shape_cast %176 : vector<8x128xf32> to vector<1x8x128xf32>
    tpu.vector_store %arg3[%c5, %c0_74, %c0_75], %204 {strides = array<i32>} : memref<11x8x128xf32, #tpu.memory_space<vmem>>, vector<1x8x128xf32>,
    %c6 = arith.constant 6 : index
    %c0_76 = arith.constant 0 : index
    %c0_77 = arith.constant 0 : index
    %205 = vector.load %arg3[%c6, %c0_76, %c0_77] : memref<11x8x128xf32, #tpu.memory_space<vmem>>, vector<1x8x128xf32>
    %206 = vector.shape_cast %205 : vector<1x8x128xf32> to vector<8x128xf32>
    %207 = vector.shape_cast %179 : vector<8x128xf32> to vector<1x8x128xf32>
    tpu.vector_store %arg3[%c6, %c0_76, %c0_77], %207 {strides = array<i32>} : memref<11x8x128xf32, #tpu.memory_space<vmem>>, vector<1x8x128xf32>,
    %c7 = arith.constant 7 : index
    %c0_78 = arith.constant 0 : index
    %c0_79 = arith.constant 0 : index
    %208 = vector.load %arg3[%c7, %c0_78, %c0_79] : memref<11x8x128xf32, #tpu.memory_space<vmem>>, vector<1x8x128xf32>
    %209 = vector.shape_cast %208 : vector<1x8x128xf32> to vector<8x128xf32>
    %210 = vector.shape_cast %186 : vector<8x128xf32> to vector<1x8x128xf32>
    tpu.vector_store %arg3[%c7, %c0_78, %c0_79], %210 {strides = array<i32>} : memref<11x8x128xf32, #tpu.memory_space<vmem>>, vector<1x8x128xf32>,
    %c8 = arith.constant 8 : index
    %c0_80 = arith.constant 0 : index
    %c0_81 = arith.constant 0 : index
    %211 = vector.load %arg3[%c8, %c0_80, %c0_81] : memref<11x8x128xf32, #tpu.memory_space<vmem>>, vector<1x8x128xf32>
    %212 = vector.shape_cast %211 : vector<1x8x128xf32> to vector<8x128xf32>
    %213 = vector.shape_cast %186 : vector<8x128xf32> to vector<1x8x128xf32>
    tpu.vector_store %arg3[%c8, %c0_80, %c0_81], %213 {strides = array<i32>} : memref<11x8x128xf32, #tpu.memory_space<vmem>>, vector<1x8x128xf32>,
    %c9 = arith.constant 9 : index
    %c0_82 = arith.constant 0 : index
    %c0_83 = arith.constant 0 : index
    %214 = vector.load %arg3[%c9, %c0_82, %c0_83] : memref<11x8x128xf32, #tpu.memory_space<vmem>>, vector<1x8x128xf32>
    %215 = vector.shape_cast %214 : vector<1x8x128xf32> to vector<8x128xf32>
    %216 = vector.shape_cast %182 : vector<8x128xf32> to vector<1x8x128xf32>
    tpu.vector_store %arg3[%c9, %c0_82, %c0_83], %216 {strides = array<i32>} : memref<11x8x128xf32, #tpu.memory_space<vmem>>, vector<1x8x128xf32>,
    %c10 = arith.constant 10 : index
    %c0_84 = arith.constant 0 : index
    %c0_85 = arith.constant 0 : index
    %217 = vector.load %arg3[%c10, %c0_84, %c0_85] : memref<11x8x128xf32, #tpu.memory_space<vmem>>, vector<1x8x128xf32>
    %218 = vector.shape_cast %217 : vector<1x8x128xf32> to vector<8x128xf32>
    %219 = vector.shape_cast %185 : vector<8x128xf32> to vector<1x8x128xf32>
    tpu.vector_store %arg3[%c10, %c0_84, %c0_85], %219 {strides = array<i32>} : memref<11x8x128xf32, #tpu.memory_space<vmem>>, vector<1x8x128xf32>,
    return
  }
  func.func @transform_0(%arg0: i32) -> (i32, i32, i32) {
    %c0_i32 = arith.constant 0 : i32
    %c0_i32_0 = arith.constant 0 : i32
    %c0_i32_1 = arith.constant 0 : i32
    return %c0_i32, %arg0, %c0_i32_0 : i32, i32, i32
  }
  func.func @transform_1(%arg0: i32) -> (i32, i32, i32) {
    %c0_i32 = arith.constant 0 : i32
    %c0_i32_0 = arith.constant 0 : i32
    %c0_i32_1 = arith.constant 0 : i32
    return %c0_i32, %arg0, %c0_i32_0 : i32, i32, i32
  }
  func.func @transform_2(%arg0: i32) -> (i32, i32, i32) {
    %c0_i32 = arith.constant 0 : i32
    %c0_i32_0 = arith.constant 0 : i32
    %c0_i32_1 = arith.constant 0 : i32
    return %c0_i32, %arg0, %c0_i32_0 : i32, i32, i32
  }
}

</mosaic_0001>

<bundles_post_ra>
// kernel: localizer_forward.2
= control target key start
LH: loop header
LB: loop body
LE: loop exit
PB: predicated region body
PF: predicated region fallthrough
CT: control target
= control target key end

     0   :  { %v64_v0 = vmov 0.0   ;;  %s110_s1 = inlined_call_operand.vmem [shape: f32[4,8,128], index: 1, kind: output, shape index: {0}]   ;;  %s111_s0 = inlined_call_operand.vmem [shape: f32[4,8,128], index: 0, kind: input, shape index: {}]   ;;  %s112_s2 = inlined_call_operand.vmem [shape: f32[4,8,128], index: 2, kind: output, shape index: {1}]  }
   0x1   :  { %30 = vst [vmem:[%s110_s1] sm:$0xff] %v64_v0  ;;  %55 = vst [vmem:[%s110_s1 + $0x8] sm:$0xff] %v64_v0  ;;  %v53_v1 = vld [vmem:[%s111_s0 + $0x10] sm:$0xff]  ;;  %v54_v2 = vld [vmem:[%s111_s0 + $0x18] sm:$0xff] }
   0x2   :  { %v14_v3 = vmul.f32 %v53_v1, %v53_v1  ;;  %v15_v4 = vmul.f32 %v54_v2, %v54_v2 }
   0x4   :  { %v16_v5 = vadd.f32 %v15_v4, %v14_v3 }
   0x6   :  { %v17_v6 = vmax.f32 %v16_v5, 1e-37  ;;  %vm19_vm0 = vcmp.gt.f32.partialorder %v16_v5, 0.0 }
   0x8   :  { %62 = vrsqrt.f32 %v17_v6 }
  0x12   :  { %v63_v7 = vpop.eup %62 }
  0x13   :  { %v20_v8 = vmul.f32 %v63_v7, %v53_v1  ;;  %v22_v9 = vmul.f32 %v63_v7, %v54_v2 }
  0x15   :  { %v21_v10 = vsel %vm19_vm0, %v20_v8, 1.0  ;;  %v23_v11 = vsel %vm19_vm0, %v22_v9, 0.0 }
  0x16   :  { %v24_v12 = vmul.f32 %v53_v1, %v21_v10  ;;  %v25_v13 = vmul.f32 %v54_v2, %v23_v11  ;;  %v27_v14 = vmul.f32 %v54_v2, %v21_v10  ;;  %v28_v15 = vmul.f32 %v53_v1, %v23_v11  ;;  %37 = vst [vmem:[%s112_s2] sm:$0xff] %v21_v10 }
  0x17   :  { %59 = vst [vmem:[%s112_s2 + $0x10] sm:$0xff] %v23_v11  ;;  %60 = vst [vmem:[%s112_s2 + $0x18] sm:$0xff] %v21_v10  ;;  %v38_v16 = vsub.f32 0.0, %v23_v11 }
  0x18   :  { %v26_v17 = vadd.f32 %v25_v13, %v24_v12  ;;  %v29_v18 = vsub.f32 %v27_v14, %v28_v15 }
  0x19   :  { %58 = vst [vmem:[%s112_s2 + $0x8] sm:$0xff] %v38_v16 }
  0x1a   :  { %56 = vst [vmem:[%s110_s1 + $0x10] sm:$0xff] %v26_v17  ;;  %57 = vst [vmem:[%s110_s1 + $0x18] sm:$0xff] %v29_v18 }

// kernel: localizer_forward.3
= control target key start
LH: loop header
LB: loop body
LE: loop exit
PB: predicated region body
PF: predicated region fallthrough
CT: control target
= control target key end

     0   :  { %v223_v3 = vmov 0.0   ;;  %s359_s0 = inlined_call_operand.vmem [shape: f32[4,8,128], index: 0, kind: input, shape index: {}]   ;;  %s360_s1 = inlined_call_operand.vmem [shape: f32[4,8,128], index: 1, kind: input, shape index: {}]   ;;  %s361_s2 = inlined_call_operand.vmem [shape: f32[11,8,128], index: 2, kind: output, shape index: {}]  }
   0x1   :  { %v11_v0 = vld [vmem:[%s359_s0] sm:$0xff]  ;;  %v186_v1 = vld [vmem:[%s359_s0 + $0x8] sm:$0xff]  ;;  %204 = vst [vmem:[%s361_s2 + $0x38] sm:$0xff] %v223_v3  ;;  %205 = vst [vmem:[%s361_s2 + $0x40] sm:$0xff] %v223_v3 }
   0x2   :  { %v18_v2 = vld [vmem:[%s360_s1] sm:$0xff]  ;;  %v189_v4 = vld [vmem:[%s360_s1 + $0x8] sm:$0xff]  ;;  %v260_v5 = vld [vmem:[%s360_s1 + $0x10] sm:$0xff] }
   0x3   :  { %v265_v6 = vld [vmem:[%s360_s1 + $0x18] sm:$0xff]  ;;  %v45_v7 = vsub.f32 %v11_v0, %v18_v2  ;;  %v25_v8 = vmul.f32 %v260_v5, %v260_v5  ;;  %v46_v10 = vsub.f32 %v186_v1, %v189_v4  ;;  %v187_v11 = vld [vmem:[%s359_s0 + $0x10] sm:$0xff] }
   0x4   :  { %v26_v9 = vmul.f32 %v265_v6, %v265_v6  ;;  %v188_v12 = vld [vmem:[%s359_s0 + $0x18] sm:$0xff]  ;;  %v35_v14 = vmul.f32 %v187_v11, %v187_v11 }
   0x5   :  { %v99_v13 = vmul.f32 %v45_v7, %v45_v7  ;;  %v36_v15 = vmul.f32 %v188_v12, %v188_v12  ;;  %v100_v17 = vmul.f32 %v46_v10, %v46_v10 }
   0x6   :  { %v27_v16 = vadd.f32 %v26_v9, %v25_v8 }
   0x7   :  { %v37_v18 = vadd.f32 %v36_v15, %v35_v14  ;;  %v101_v20 = vadd.f32 %v100_v17, %v99_v13 }
   0x8   :  { %v28_v19 = vmax.f32 %v27_v16, 1e-37  ;;  %vm30_vm0 = vcmp.gt.f32.partialorder %v27_v16, 0.0 }
   0x9   :  { %v38_v21 = vmax.f32 %v37_v18, 1e-37  ;;  %vm40_vm1 = vcmp.gt.f32.partialorder %v37_v18, 0.0  ;;  %vm104_vm2 = vcmp.eq.f32.partialorder %v101_v20, inf  ;;  %vm106_vm3 = vcmp.eq.f32.partialorder %v101_v20, 0.0 }
   0xa   :  { %209 = vrsqrt.f32 %v28_v19  ;;  %v107_v32 = vand.u32 2147483648, %v101_v20 }
   0xb   :  { %211 = vrsqrt.f32 %v38_v21 }
   0xc   :  { %213 = vrsqrt.f32 %v101_v20 }
  0x14   :  { %v210_v22 = vpop.eup %209 }
  0x15   :  { %v212_v23 = vpop.eup %211  ;;  %v31_v24 = vmul.f32 %v210_v22, %v260_v5  ;;  %v33_v25 = vmul.f32 %v210_v22, %v265_v6 }
  0x16   :  { %v214_v26 = vpop.eup %213  ;;  %v41_v27 = vmul.f32 %v212_v23, %v187_v11  ;;  %v43_v28 = vmul.f32 %v212_v23, %v188_v12 }
  0x17   :  { %v32_v29 = vsel %vm30_vm0, %v31_v24, 1.0  ;;  %v34_v30 = vsel %vm30_vm0, %v33_v25, 0.0  ;;  %v103_v31 = vmul.f32 %v214_v26, %v101_v20 }
  0x18   :  { %v47_v33 = vmul.f32 %v45_v7, %v32_v29  ;;  %v48_v34 = vmul.f32 %v46_v10, %v34_v30  ;;  %v50_v35 = vmul.f32 %v46_v10, %v32_v29  ;;  %v51_v36 = vmul.f32 %v45_v7, %v34_v30 }
  0x19   :  { %v42_v37 = vsel %vm40_vm1, %v41_v27, 1.0  ;;  %v44_v38 = vsel %vm40_vm1, %v43_v28, 0.0  ;;  %v105_v39 = vsel %vm104_vm2, %v101_v20, %v103_v31  ;;  %v149_v40 = vmul.f32 %v187_v11, %v32_v29 }
  0x1a   :  { %v279_v41 = vadd.f32 %v48_v34, %v47_v33  ;;  %v281_v42 = vsub.f32 %v50_v35, %v51_v36  ;;  %v53_v43 = vmul.f32 %v42_v37, %v32_v29  ;;  %v54_v44 = vmul.f32 %v44_v38, %v34_v30 }
  0x1b   :  { %v56_v45 = vmul.f32 %v44_v38, %v32_v29  ;;  %v57_v46 = vmul.f32 %v42_v37, %v34_v30  ;;  %v108_v47 = vsel %vm106_vm3, %v107_v32, %v105_v39  ;;  %v150_v48 = vmul.f32 %v188_v12, %v34_v30 }
  0x1c   :  { %v285_v49 = vand.u32 2147483647, %v279_v41  ;;  %161 = vst [vmem:[%s361_s2] sm:$0xff] %v279_v41  ;;  %v292_v50 = vand.u32 2147483647, %v281_v42  ;;  %198 = vst [vmem:[%s361_s2 + $0x8] sm:$0xff] %v281_v42  ;;  %v298_v51 = vadd.f32 %v54_v44, %v53_v43  ;;  %v152_v54 = vmul.f32 %v188_v12, %v32_v29 }
  0x1d   :  { %200 = vst [vmem:[%s361_s2 + $0x18] sm:$0xff] %v108_v47  ;;  %v303_v52 = vsub.f32 %v56_v45, %v57_v46  ;;  %v151_v53 = vadd.f32 %v150_v48, %v149_v40  ;;  %v153_v58 = vmul.f32 %v187_v11, %v34_v30  ;;  %v155_v60 = vmul.f32 %v260_v5, %v32_v29 }
  0x1e   :  { %v111_v55 = vmax.f32 %v285_v49, %v292_v50  ;;  %v308_v56 = vand.u32 2147483647, %v298_v51  ;;  %vm140_vm4 = vcmp.gt.f32.partialorder %v292_v50, %v285_v49  ;;  %v156_v61 = vmul.f32 %v265_v6, %v34_v30 }
  0x1f   :  { %v311_v57 = vand.u32 2147483647, %v303_v52  ;;  %202 = vst [vmem:[%s361_s2 + $0x28] sm:$0xff] %v151_v53  ;;  %v158_v62 = vmul.f32 %v265_v6, %v32_v29  ;;  %v154_v0 = vsub.f32 %v152_v54, %v153_v58  ;;  %v159_v2 = vmul.f32 %v260_v5, %v34_v30 }
  0x20   :  { %v113_v59 = vmax.f32 %v111_v55, 1e-30  ;;  %v157_v1 = vadd.f32 %v156_v61, %v155_v60  ;;  %v112_v5 = vmin.f32 %v285_v49, %v292_v50  ;;  %vm143_vm8 = vcmp.lt.f32.partialorder %v279_v41, 0.0 }
  0x21   :  { %v61_v63 = vmax.f32 %v308_v56, %v311_v57  ;;  %vm90_vm5 = vcmp.gt.f32.partialorder %v311_v57, %v308_v56  ;;  %203 = vst [vmem:[%s361_s2 + $0x30] sm:$0xff] %v154_v0  ;;  %v160_v4 = vsub.f32 %v158_v62, %v159_v2  ;;  %v62_v12 = vmin.f32 %v308_v56, %v311_v57 }
  0x22   :  { %215 = vrcp.f32 %v113_v59  ;;  %206 = vst [vmem:[%s361_s2 + $0x48] sm:$0xff] %v157_v1  ;;  %vm93_vm9 = vcmp.lt.f32.partialorder %v298_v51, 0.0  ;;  %vm146_vm10 = vcmp.lt.f32.partialorder %v281_v42, 0.0  ;;  %vm96_vm11 = vcmp.lt.f32.partialorder %v303_v52, 0.0 }
  0x23   :  { %v63_v3 = vmax.f32 %v61_v63, 1e-30  ;;  %207 = vst [vmem:[%s361_s2 + $0x50] sm:$0xff] %v160_v4 }
  0x25   :  { %217 = vrcp.f32 %v63_v3 }
  0x2c   :  { %v216_v6 = vpop.eup %215 }
  0x2d   :  { %v115_v7 = vmul.f32 %v216_v6, %v113_v59 }
  0x2f   :  { %v218_v8 = vpop.eup %217  ;;  %v116_v9 = vsub.f32 2.0, %v115_v7 }
  0x30   :  { %v65_v10 = vmul.f32 %v218_v8, %v63_v3 }
  0x31   :  { %v117_v11 = vmul.f32 %v216_v6, %v116_v9 }
  0x32   :  { %v66_v13 = vsub.f32 2.0, %v65_v10 }
  0x33   :  { %v118_v14 = vmul.f32 %v117_v11, %v112_v5 }
  0x34   :  { %v67_v15 = vmul.f32 %v218_v8, %v66_v13 }
  0x35   :  { %v121_v16 = vadd.f32 1.0, %v118_v14  ;;  %v195_v22 = vadd.f32 -1.0, %v118_v14  ;;  %vm119_vm6 = vcmp.gt.f32.partialorder %v118_v14, 0.41421357 }
  0x36   :  { %v68_v17 = vmul.f32 %v67_v15, %v62_v12 }
  0x37   :  { %219 = vrcp.f32 %v121_v16 }
  0x38   :  { %v71_v18 = vadd.f32 1.0, %v68_v17  ;;  %v192_v26 = vadd.f32 -1.0, %v68_v17  ;;  %vm69_vm7 = vcmp.gt.f32.partialorder %v68_v17, 0.41421357 }
  0x3a   :  { %221 = vrcp.f32 %v71_v18 }
  0x41   :  { %v220_v19 = vpop.eup %219 }
  0x42   :  { %v123_v20 = vmul.f32 %v220_v19, %v121_v16 }
  0x44   :  { %v222_v21 = vpop.eup %221  ;;  %v124_v23 = vsub.f32 2.0, %v123_v20 }
  0x45   :  { %v73_v24 = vmul.f32 %v222_v21, %v71_v18 }
  0x46   :  { %v125_v25 = vmul.f32 %v220_v19, %v124_v23 }
  0x47   :  { %v74_v27 = vsub.f32 2.0, %v73_v24 }
  0x48   :  { %v126_v28 = vmul.f32 %v195_v22, %v125_v25 }
  0x49   :  { %v75_v29 = vmul.f32 %v222_v21, %v74_v27 }
  0x4a   :  { %v127_v30 = vsel %vm119_vm6, %v126_v28, %v118_v14 }
  0x4b   :  { %v76_v31 = vmul.f32 %v192_v26, %v75_v29  ;;  %v128_v32 = vmul.f32 %v127_v30, %v127_v30 }
  0x4d   :  { %v77_v33 = vsel %vm69_vm7, %v76_v31, %v68_v17  ;;  %v129_v34 = vmul.f32 0.080537446, %v128_v32 }
  0x4e   :  { %v78_v35 = vmul.f32 %v77_v33, %v77_v33 }
  0x4f   :  { %v196_v36 = vadd.f32 -0.13877685, %v129_v34 }
  0x50   :  { %v79_v37 = vmul.f32 0.080537446, %v78_v35 }
  0x51   :  { %v131_v38 = vmul.f32 %v196_v36, %v128_v32 }
  0x52   :  { %v193_v39 = vadd.f32 -0.13877685, %v79_v37 }
  0x53   :  { %v132_v40 = vadd.f32 0.19977711, %v131_v38 }
  0x54   :  { %v81_v43 = vmul.f32 %v193_v39, %v78_v35 }
  0x55   :  { %v133_v44 = vmul.f32 %v132_v40, %v128_v32 }
  0x56   :  { %v82_v45 = vadd.f32 0.19977711, %v81_v43 }
  0x57   :  { %v197_v46 = vadd.f32 -0.3333295, %v133_v44 }
  0x58   :  { %v83_v47 = vmul.f32 %v82_v45, %v78_v35 }
  0x59   :  { %v135_v48 = vmul.f32 %v197_v46, %v128_v32 }
  0x5a   :  { %v194_v53 = vadd.f32 -0.3333295, %v83_v47 }
  0x5b   :  { %v136_v54 = vmul.f32 %v135_v48, %v127_v30 }
  0x5c   :  { %v85_v55 = vmul.f32 %v194_v53, %v78_v35 }
  0x5d   :  { %v137_v58 = vadd.f32 %v136_v54, %v127_v30 }
  0x5e   :  { %v86_v59 = vmul.f32 %v85_v55, %v77_v33 }
  0x5f   :  { %v138_v60 = vadd.f32 0.7853982, %v137_v58 }
  0x60   :  { %v87_v61 = vadd.f32 %v86_v59, %v77_v33 }
  0x61   :  { %v139_v62 = vsel %vm119_vm6, %v138_v60, %v137_v58 }
  0x62   :  { %v88_v63 = vadd.f32 0.7853982, %v87_v61  ;;  %v141_v0 = vsub.f32 1.5707964, %v139_v62 }
  0x64   :  { %v89_v1 = vsel %vm69_vm7, %v88_v63, %v87_v61  ;;  %v142_v2 = vsel %vm140_vm4, %v141_v0, %v139_v62 }
  0x65   :  { %v91_v3 = vsub.f32 1.5707964, %v89_v1  ;;  %v144_v4 = vsub.f32 3.1415927, %v142_v2 }
  0x67   :  { %v92_v6 = vsel %vm90_vm5, %v91_v3, %v89_v1  ;;  %v145_v7 = vsel %vm143_vm8, %v144_v4, %v142_v2 }
  0x68   :  { %v94_v8 = vsub.f32 3.1415927, %v92_v6  ;;  %v147_v5 = vsub.f32 0.0, %v145_v7 }
  0x6a   :  { %v95_v9 = vsel %vm93_vm9, %v94_v8, %v92_v6  ;;  %v148_v49 = vsel %vm146_vm10, %v147_v5, %v145_v7 }
  0x6b   :  { %v97_v50 = vsub.f32 0.0, %v95_v9  ;;  %201 = vst [vmem:[%s361_s2 + $0x20] sm:$0xff] %v148_v49 }
  0x6d   :  { %v98_v41 = vsel %vm96_vm11, %v97_v50, %v95_v9 }
  0x6e   :  { %199 = vst [vmem:[%s361_s2 + $0x10] sm:$0xff] %v98_v41 }

</bundles_post_ra>
